<compile_context>
chip_gen: v5e
topology: v5e:2x2
jax: 0.10.0
libtpu: 0.0.40
codegen_flags: <defaults>
</compile_context>

<pallas_src>
import functools

import jax
import jax.numpy as jnp
from jax.experimental import pallas as pl
from jax.experimental.pallas import tpu as pltpu


def _graph_lstm_kernel(x_ref, w1_ref, b1_ref, w2_ref, b2_ref, out_ref, *,
                       hidden_size, seq_len):
    """Single invocation: last-step LSTM cell (zero state) + output Linear."""
    H = hidden_size

    # Only the last timestep contributes to the output (state is re-zeroed on
    # every step).  Static slice of the VMEM-resident input — no wrapper op.
    x_last = x_ref[:, seq_len - 1, :]                          # [N, D]

    # [x_last, 0] @ W1 + b1 == x_last @ W1[:D, :] + b1   (hx[0] is always 0).
    # Top D rows of W1: sublane-aligned static slice (D % 8 == 0).
    w1_x = w1_ref[:H, :]                                       # [D, 4H]
    iouf = jnp.dot(x_last, w1_x,
                   preferred_element_type=jnp.float32) + b1_ref[...]   # [N, 4H]

    # Gate quarters are (i, o, u, f) — the torch.split order in GraphLSTMCell.
    # Apply activations full-width (4H = 128 lanes = one lane tile): sigmoid on
    # the i/o half, tanh on the u/f half.  The f quarter is dead (f * hx[1] == 0)
    # so whatever lands there is never read.
    lane = jax.lax.broadcasted_iota(jnp.int32, iouf.shape, 1)
    act = jnp.where(lane < 2 * H, jax.nn.sigmoid(iouf), jnp.tanh(iouf))

    # Align gates with XLU lane rotations instead of sub-128-lane slices.
    # roll by 2H is exactly half the 4H axis, so it is direction-agnostic:
    #   prod lanes [0,H)   = sigmoid(i) * tanh(u)  = cy
    #   prod lanes [2H,3H) = tanh(u) * sigmoid(i)  = cy   (same values)
    act_sw = pltpu.roll(act, shift=2 * H, axis=1)
    prod = act * act_sw
    tcy = jnp.tanh(prod)                 # tanh(cy) in lanes [0,H) AND [2H,3H)
    # Rolling tcy by H (either rotation convention) puts tanh(cy) in [H,2H),
    # right under the o gate of `act`.
    tcy_sh = pltpu.roll(tcy, shift=H, axis=1)
    hy_full = act * tcy_sh               # lanes [H,2H): o * tanh(cy) == hy
    hy = hy_full[:, H:2 * H]             # [N, H] — single lane slice

    out = jnp.dot(hy, w2_ref[...],
                  preferred_element_type=jnp.float32) + b2_ref[...]    # [N, O]
    out_ref[...] = out.astype(out_ref.dtype)


def graph_lstm_forward(x_ntd, w1, b1, w2, b2):
    """GraphLSTM forward.  x_ntd: [N, T, D] node-major (PyTorch layout).

    Weights stored pre-transposed as [in_features, out_features]:
      w1: [2D, 4D], b1: [1, 4D], w2: [D, O], b2: [1, O].  Returns [N, O].
    """
    N, T, D = x_ntd.shape
    if T < 1:
        raise ValueError("GraphLSTM requires at least one time step (T >= 1).")
    H = D
    O = w2.shape[1]

    kernel = functools.partial(_graph_lstm_kernel, hidden_size=H, seq_len=T)

    # Gridless call: one kernel invocation, all operands whole-array in VMEM.
    return pl.pallas_call(
        kernel,
        out_shape=jax.ShapeDtypeStruct((N, O), jnp.float32),
        in_specs=[
            pl.BlockSpec(memory_space=pltpu.MemorySpace.VMEM),   # x   [N, T, D]
            pl.BlockSpec(memory_space=pltpu.MemorySpace.VMEM),   # w1  [2D, 4H]
            pl.BlockSpec(memory_space=pltpu.MemorySpace.VMEM),   # b1  [1, 4H]
            pl.BlockSpec(memory_space=pltpu.MemorySpace.VMEM),   # w2  [H, O]
            pl.BlockSpec(memory_space=pltpu.MemorySpace.VMEM),   # b2  [1, O]
        ],
        out_specs=pl.BlockSpec(memory_space=pltpu.MemorySpace.VMEM),
    )(x_ntd, w1, b1, w2, b2)


def ref_forward(x_ntd, w1, b1, w2, b2):
    """Pure-JAX reference: literal transcription of the PyTorch forward."""
    N, T, D = x_ntd.shape
    H = D
    hp = jax.lax.Precision.HIGHEST
    hy = None
    for t in range(T):
        xt = x_ntd[:, t, :]
        hx0 = jnp.zeros((N, H), jnp.float32)
        hx1 = jnp.zeros((N, H), jnp.float32)
        iouf = jnp.dot(jnp.concatenate([xt, hx0], axis=-1), w1, precision=hp) + b1
        i, o, u, f = jnp.split(iouf, 4, axis=-1)
        i, o, u, f = (jax.nn.sigmoid(i), jax.nn.sigmoid(o),
                      jnp.tanh(u), jax.nn.sigmoid(f))
        cy = i * u + f * hx1
        hy = o * jnp.tanh(cy)
    return jnp.dot(hy, w2, precision=hp) + b2


if __name__ == "__main__":
    N_NODES = 16      # graph.number_of_nodes()
    SEQ = 8           # input_data.size(1)
    INPUT_SIZE = 32   # == hidden_size of the cell
    OUTPUT_SIZE = 16

    key = jax.random.PRNGKey(0)
    kx, k1, k2, k3, k4 = jax.random.split(key, 5)

    # Deterministic synthetic parameters (PyTorch Linear shapes, pre-transposed
    # to [in_features, out_features]).
    x = jax.random.normal(kx, (N_NODES, SEQ, INPUT_SIZE), jnp.float32)
    w_cell = jax.random.normal(k1, (2 * INPUT_SIZE, 4 * INPUT_SIZE),
                               jnp.float32) * 0.1
    b_cell = jax.random.normal(k2, (1, 4 * INPUT_SIZE), jnp.float32) * 0.1
    w_out = jax.random.normal(k3, (INPUT_SIZE, OUTPUT_SIZE), jnp.float32) * 0.1
    b_out = jax.random.normal(k4, (1, OUTPUT_SIZE), jnp.float32) * 0.1

    fwd = jax.jit(graph_lstm_forward)
    out = jax.block_until_ready(fwd(x, w_cell, b_cell, w_out, b_out))

    ref = ref_forward(x, w_cell, b_cell, w_out, b_out)
    assert out.shape == (N_NODES, OUTPUT_SIZE)
    # Typical agreement is <= 1e-5; the loose bound only covers a possible
    # reduced-precision (bf16-pass) MXU f32 path on some generations.  Any
    # structural bug (wrong timestep, wrong gate order, wrong activation)
    # produces O(0.1 - 1) errors and is still caught.
    max_err = float(jnp.max(jnp.abs(out - ref)))
    assert jnp.allclose(out, ref, atol=1e-2, rtol=1e-2), max_err

    print("KERNEL_OK")
</pallas_src>

<mosaic_0001>
module attributes {stable_mosaic.version = 11 : i64} {
  func.func @_graph_lstm_kernel(%arg0: memref<16x8x32xf32, #tpu.memory_space<vmem>>, %arg1: memref<64x128xf32, #tpu.memory_space<vmem>>, %arg2: memref<1x128xf32, #tpu.memory_space<vmem>>, %arg3: memref<32x16xf32, #tpu.memory_space<vmem>>, %arg4: memref<1x16xf32, #tpu.memory_space<vmem>>, %arg5: memref<16x16xf32, #tpu.memory_space<vmem>>) attributes {dimension_semantics = [], scalar_prefetch = 0 : i64, scratch_operands = 0 : i64, tpu.core_type = #tpu.core_type<tc>} {
    %c0 = arith.constant 0 : index
    %c7 = arith.constant 7 : index
    %c0_0 = arith.constant 0 : index
    %0 = vector.load %arg0[%c0, %c7, %c0_0] : memref<16x8x32xf32, #tpu.memory_space<vmem>>, vector<16x1x32xf32>
    %1 = vector.shape_cast %0 : vector<16x1x32xf32> to vector<16x32xf32>
    %c0_1 = arith.constant 0 : index
    %c0_2 = arith.constant 0 : index
    %2 = vector.load %arg1[%c0_1, %c0_2] : memref<64x128xf32, #tpu.memory_space<vmem>>, vector<32x128xf32>
    %cst = arith.constant dense<0.000000e+00> : vector<16x128xf32>
    %3 = tpu.matmul %1, %2, %cst {dimension_numbers = #tpu.dot_dimension_numbers<[1], [0], [0], [1], [0, 0, 1, 1], [], []>} : vector<16x32xf32>, vector<32x128xf32>, vector<16x128xf32> -> vector<16x128xf32>
    %c0_3 = arith.constant 0 : index
    %c0_4 = arith.constant 0 : index
    %4 = vector.load %arg2[%c0_3, %c0_4] : memref<1x128xf32, #tpu.memory_space<vmem>>, vector<1x128xf32>
    %5 = vector.broadcast %4 : vector<1x128xf32> to vector<16x128xf32>
    %6 = arith.addf %3, %5 : vector<16x128xf32>
    %7 = tpu.iota {dimensions = array<i32: 1>} : vector<16x128xi32>
    %c64_i32 = arith.constant 64 : i32
    %8 = vector.broadcast %c64_i32 : i32 to vector<16x128xi32>
    %9 = arith.cmpi slt, %7, %8 : vector<16x128xi32>
    %10 = arith.negf %6 : vector<16x128xf32>
    %11 = math.exp %10 : vector<16x128xf32>
    %cst_5 = arith.constant 1.000000e+00 : f32
    %12 = vector.broadcast %cst_5 : f32 to vector<16x128xf32>
    %13 = arith.addf %12, %11 : vector<16x128xf32>
    %14 = arith.divf %12, %13 : vector<16x128xf32>
    %15 = math.tanh %6 : vector<16x128xf32>
    %16 = arith.select %9, %14, %15 : vector<16x128xi1>, vector<16x128xf32>
    %c64_i32_6 = arith.constant 64 : i32
    %17 = tpu.dynamic_rotate %16 by %c64_i32_6 dim 1 : vector<16x128xf32>, i32 -> vector<16x128xf32>
    %18 = arith.mulf %16, %17 : vector<16x128xf32>
    %19 = math.tanh %18 : vector<16x128xf32>
    %c32_i32 = arith.constant 32 : i32
    %20 = tpu.dynamic_rotate %19 by %c32_i32 dim 1 : vector<16x128xf32>, i32 -> vector<16x128xf32>
    %21 = arith.mulf %16, %20 : vector<16x128xf32>
    %22 = vector.extract_strided_slice %21 {offsets = [0, 32], sizes = [16, 32], strides = [1, 1]} : vector<16x128xf32> to vector<16x32xf32>
    %c0_7 = arith.constant 0 : index
    %c0_8 = arith.constant 0 : index
    %23 = vector.load %arg3[%c0_7, %c0_8] : memref<32x16xf32, #tpu.memory_space<vmem>>, vector<32x16xf32>
    %cst_9 = arith.constant dense<0.000000e+00> : vector<16x16xf32>
    %24 = tpu.matmul %22, %23, %cst_9 {dimension_numbers = #tpu.dot_dimension_numbers<[1], [0], [0], [1], [0, 0, 1, 1], [], []>} : vector<16x32xf32>, vector<32x16xf32>, vector<16x16xf32> -> vector<16x16xf32>
    %c0_10 = arith.constant 0 : index
    %c0_11 = arith.constant 0 : index
    %25 = vector.load %arg4[%c0_10, %c0_11] : memref<1x16xf32, #tpu.memory_space<vmem>>, vector<1x16xf32>
    %26 = vector.broadcast %25 : vector<1x16xf32> to vector<16x16xf32>
    %27 = arith.addf %24, %26 : vector<16x16xf32>
    %c0_12 = arith.constant 0 : index
    %c0_13 = arith.constant 0 : index
    %28 = vector.load %arg5[%c0_12, %c0_13] : memref<16x16xf32, #tpu.memory_space<vmem>>, vector<16x16xf32>
    tpu.vector_store %arg5[%c0_12, %c0_13], %27 {strides = array<i32>} : memref<16x16xf32, #tpu.memory_space<vmem>>, vector<16x16xf32>,
    return
  }
}

</mosaic_0001>

<bundles_post_ra>
// kernel: graph_lstm_forward.1
= control target key start
LH: loop header
LB: loop body
LE: loop exit
PB: predicated region body
PF: predicated region fallthrough
CT: control target
= control target key end

     0   :  { %10 = vsyncpa [#allocation3], 0  ;;  %s489_s0 = inlined_call_operand.hbm [shape: f32[16,8,32], index: 0, kind: input, shape index: {}]   ;;  %s490_s1 = inlined_call_operand.hbm [shape: f32[64,128], index: 1, kind: input, shape index: {}]   ;;  %s491_s2 = inlined_call_operand.vmem [shape: f32[1,128], index: 2, kind: input, shape index: {}]   ;;  %s492_s3 = inlined_call_operand.vmem [shape: f32[32,16], index: 3, kind: input, shape index: {}]   ;;  %s493_s4 = inlined_call_operand.vmem [shape: f32[1,16], index: 4, kind: input, shape index: {}]   ;;  %s494_s5 = inlined_call_operand.hbm [shape: f32[16,16], index: 5, kind: output, shape index: {}]  }
   0x1   :  { %11 = vsyncpa [#allocation6], 0 }
   0x2   :  { %12 = vsyncpa [#allocation4], 0  ;;  %s17_s20 = sshll.u32 %s489_s0, 4  ;;  %s397_s21 = smov [#allocation2]   ;;  %s18_s20 = int_to_ptr.hbm [resolvable:$true] %s17_s20 }
   0x3   :  { %s19_s22 = sshll.u32 %s397_s21, 4  ;;  %s30_s25 = sshll.u32 %s490_s1, 4  ;;  %s20_s22 = int_to_ptr.vmem [resolvable:$true] %s19_s22  ;;  %s31_s25 = int_to_ptr.hbm [resolvable:$true] %s30_s25 }
   0x4   :  { %s398_s26 = smov 128   ;;  %s399_s27 = smov 8  }
   0x5   :  { %25 = dma.hbm_to_vmem [thread:$0]  %s18_s20, 2048, %s20_s22, [#allocation3], %s398_s26, %s398_s26, %s399_s27  }
   0x6   :  { %s400_s28 = smov [#allocation5]  }
   0x7   :  { %s32_s29 = sshll.u32 %s400_s28, 4  ;;  %s33_s29 = int_to_ptr.vmem [resolvable:$true] %s32_s29 }
   0x8   :  { %38 = dma.hbm_to_vmem [thread:$0]  %s31_s25, 1024, %s33_s29, [#allocation6], %s398_s26, %s398_s26, %s399_s27  }
   0x9   :  { %391 = dma.done.wait [#allocation3], 2048  }
   0xa   :  { %392 = vsyncadd [#allocation3], 4294965248 }
   0xb   :  { %393 = dma.done.wait [#allocation6], 1024  }
   0xc   :  { %394 = vsyncadd [#allocation6], 4294966272  ;;  %v72_v0 = vld [vmem:[#allocation5 + $0x18] sm:$0xff]  ;;  %v71_v1 = vld [vmem:[#allocation5 + $0x10] sm:$0xff]  ;;  %vm94_vm0 = vcmask 1041409   ;;  %vm97_vm1 = vcmask 1042434  }
   0xd   :  { %vm100_vm2 = vcmask 1043459   ;;  %145 = vmatpush.msra.mxu0 %v72_v0  ;;  %285 = vmatpush.msra.mxu2 %v72_v0  ;;  %v70_v2 = vld [vmem:[#allocation5 + $0x8] sm:$0xff]  ;;  %vm103_vm3 = vcmask 1044484   ;;  %vm106_vm4 = vcmask 1045509   ;;  %vm109_vm5 = vcmask 1046534   ;;  %v69_v10 = vld [vmem:[#allocation5] sm:$0xff] }
   0xe   :  { %v54_v3 = vld [vmem:[#allocation2 + $0xf] sm:$0x1]  ;;  %v55_v4 = vld [vmem:[#allocation2 + $0x17] sm:$0x1]  ;;  %v56_v5 = vld [vmem:[#allocation2 + $0x1f] sm:$0x1]  ;;  %v156_v0 = vlaneseq }
   0xf   :  { %v57_v6 = vld [vmem:[#allocation2 + $0x27] sm:$0x1]  ;;  %146 = vmatpush.msra.mxu0 %v71_v1  ;;  %286 = vmatpush.msra.mxu2 %v71_v1  ;;  %v58_v8 = vld [vmem:[#allocation2 + $0x2f] sm:$0x1]  ;;  %v59_v9 = vld [vmem:[#allocation2 + $0x37] sm:$0x1] }
  0x10   :  { %v53_v7 = vld [vmem:[#allocation2 + $0x7] sm:$0x1]  ;;  %v60_v11 = vld [vmem:[#allocation2 + $0x3f] sm:$0x1]  ;;  %v93_v12 = vrot.slane %v54_v3, 7  ;;  %v96_v13 = vrot.slane %v55_v4, 6 }
  0x11   :  { %v99_v14 = vrot.slane %v56_v5, 5  ;;  %147 = vmatpush.msra.mxu0 %v70_v2  ;;  %287 = vmatpush.msra.mxu2 %v70_v2  ;;  %v102_v15 = vrot.slane %v57_v6, 4  ;;  %v105_v16 = vrot.slane %v58_v8, 3  ;;  %v61_v17 = vld [vmem:[#allocation2 + $0x47] sm:$0x1]  ;;  %v108_v24 = vrot.slane %v59_v9, 2 }
  0x12   :  { %v62_v18 = vld [vmem:[#allocation2 + $0x4f] sm:$0x1]  ;;  %v95_v19 = vsel %vm94_vm0, %v93_v12, %v53_v7  ;;  %v63_v20 = vld [vmem:[#allocation2 + $0x57] sm:$0x1]  ;;  %v64_v21 = vld [vmem:[#allocation2 + $0x5f] sm:$0x1] }
  0x13   :  { %v65_v22 = vld [vmem:[#allocation2 + $0x67] sm:$0x1]  ;;  %148 = vmatpush.msra.mxu0 %v69_v10  ;;  %288 = vmatpush.msra.mxu2 %v69_v10  ;;  %v98_v23 = vsel %vm97_vm1, %v96_v13, %v95_v19  ;;  %v111_v25 = vrot.slane %v60_v11, 1  ;;  %v66_v26 = vld [vmem:[#allocation2 + $0x6f] sm:$0x1]  ;;  %v114_v29 = vrot.slane %v62_v18, 7 }
  0x14   :  { %v67_v27 = vld [vmem:[#allocation2 + $0x77] sm:$0x1]  ;;  %v101_v28 = vsel %vm100_vm2, %v99_v14, %v98_v23  ;;  %v116_v30 = vrot.slane %v63_v20, 6  ;;  %v118_v31 = vrot.slane %v64_v21, 5  ;;  %vm112_vm6 = vcmask 1047559   ;;  %s402_s30 = smov 32  }
  0x15   :  { %v104_v32 = vsel %vm103_vm3, %v102_v15, %v101_v28  ;;  %v68_v33 = vld [vmem:[#allocation2 + $0x7f] sm:$0x1]  ;;  %v120_v34 = vrot.slane %v65_v22, 4  ;;  %vm128_vm7 = vcmask 261120   ;;  %v115_v36 = vsel %vm94_vm0, %v114_v29, %v61_v17  ;;  %v301_v48 = vld [vmem:[%s491_s2] ss:$0 sm:$0xff] }
  0x16   :  { %v107_v35 = vsel %vm106_vm4, %v105_v16, %v104_v32  ;;  %v122_v37 = vrot.slane %v66_v26, 3  ;;  %v117_v39 = vsel %vm97_vm1, %v116_v30, %v115_v36  ;;  %v124_v40 = vrot.slane %v67_v27, 2  ;;  %s401_s2 = smov 64   ;;  %v218_v27 = vld [vmem:[%s492_s3 + $0x18] sm:$0xff]  ;;  %v217_v28 = vld [vmem:[%s492_s3 + $0x10] sm:$0xff]  ;;  %v216_v29 = vld [vmem:[%s492_s3 + $0x8] sm:$0xff] }
  0x17   :  { %v110_v38 = vsel %vm109_vm5, %v108_v24, %v107_v35  ;;  %v119_v42 = vsel %vm100_vm2, %v118_v31, %v117_v39  ;;  %v126_v43 = vrot.slane %v68_v33, 1  ;;  %v157_v6 = vand.u32 127, %v156_v0  ;;  %289 = vmatpush.msra.mxu3 %v218_v27  ;;  %245 = vmatpush.msra.mxu1 %v218_v27  ;;  %v215_v30 = vld [vmem:[%s492_s3] sm:$0xff]  ;;  %s403_s14 = smov 96   ;;  %s404_s3 = smov [#allocation7]  }
  0x18   :  { %v113_v41 = vsel %vm112_vm6, %v111_v25, %v110_v38  ;;  %v121_v44 = vsel %vm103_vm3, %v120_v34, %v119_v42  ;;  %vm256_vm1 = vcmask 130048   ;;  %s263_s17 = sshll.u32 %s404_s3, 4  ;;  %s265_s20 = sshll.u32 %s494_s5, 4  ;;  %s264_s17 = int_to_ptr.vmem [resolvable:$true] %s263_s17  ;;  %s266_s20 = int_to_ptr.hbm [resolvable:$true] %s265_s20 }
  0x19   :  { %279 = vmatmul.msk.f32.vlgmr.msra.gmra.mxu0 %vm128_vm7, %v113_v41  ;;  %v123_v45 = vsel %vm106_vm4, %v122_v37, %v121_v44  ;;  %vm158_vm14 = vcmp.lt.s32.totalorder %v157_v6, 64  ;;  %290 = vmatpush.msra.mxu3 %v217_v28  ;;  %v302_v37 = vld [vmem:[%s493_s4] ss:$0 sm:$0xff] }
  0x1a   :  { %v125_v46 = vsel %vm109_vm5, %v124_v40, %v123_v45  ;;  %246 = vmatpush.msra.mxu1 %v217_v28 }
  0x1b   :  { %v127_v47 = vsel %vm112_vm6, %v126_v43, %v125_v46  ;;  %291 = vmatpush.msra.mxu3 %v216_v29 }
  0x1c   :  { %280 = vmatmul.msk.f32.vlgmr.msra.gmra.mxu2 %vm128_vm7, %v127_v47  ;;  %247 = vmatpush.msra.mxu1 %v216_v29 }
  0x1d   :  { %292 = vmatpush.msra.mxu3 %v215_v30 }
  0x1e   :  { %248 = vmatpush.msra.mxu1 %v215_v30 }
  0x96   :  { %v150_v49 = vpop.f32.mrf.mxu0 }
  0x97   :  { %v151_v50 = vadd.f32 %v301_v48, %v150_v49 }
  0x99   :  { %v281_v51 = vmul.f32 -1.442695, %v151_v50 }
  0x9b   :  { %303 = vpow2.f32 %v281_v51 }
  0x9f   :  { %v153_v52 = vpop.f32.mrf.mxu2 }
  0xa0   :  { %v154_v54 = vadd.f32 %v301_v48, %v153_v52 }
  0xa1   :  { %v304_v53 = vpop.eup %303 }
  0xa2   :  { %v282_v55 = vmul.f32 -1.442695, %v154_v54  ;;  %v165_v56 = vadd.f32 1.0, %v304_v53 }
  0xa4   :  { %305 = vpow2.f32 %v282_v55  ;;  %vm172_vm10 = vweird.f32 %v165_v56  ;;  %v178_v9 = vand.u32 2147483648, %v165_v56  ;;  %v176_v12 = vand.u32 2147483647, %v165_v56 }
  0xa5   :  { %307 = vrcp.f32 %v165_v56 }
  0xa6   :  { %v179_v16 = vor.u32 1.1754944e-38, %v178_v9  ;;  %vm177_vm0 = vcmp.eq.f32.partialorder %v176_v12, 8.507059e+37 }
  0xaa   :  { %v306_v57 = vpop.eup %305 }
  0xab   :  { %v166_v58 = vadd.f32 1.0, %v306_v57  ;;  %v308_v59 = vpop.eup %307 }
  0xac   :  { %v168_v60 = vmul.f32 %v308_v59, %v165_v56  ;;  %vm173_vm11 = vweird.f32 %v308_v59 }
  0xad   :  { %309 = vrcp.f32 %v166_v58  ;;  %v193_v2 = vand.u32 2147483648, %v166_v58  ;;  %v191_v4 = vand.u32 2147483647, %v166_v58  ;;  %vm187_vm9 = vweird.f32 %v166_v58  ;;  %vm174_vm15 = vmor %vm172_vm10, %vm173_vm11 }
  0xae   :  { %v169_v63 = vsub.f32 1.0, %v168_v60  ;;  %311 = vtanh.f32 %v154_v54 }
  0xaf   :  { %v194_v8 = vor.u32 1.1754944e-38, %v193_v2  ;;  %vm192_vm13 = vcmp.eq.f32.partialorder %v191_v4, 8.507059e+37  ;;  %313 = vtanh.f32 %v151_v50 }
  0xb0   :  { %v170_v5 = vmul.f32 %v308_v59, %v169_v63 }
  0xb2   :  { %v171_v11 = vadd.f32 %v308_v59, %v170_v5 }
  0xb3   :  { %v310_v61 = vpop.eup %309 }
  0xb4   :  { %v183_v62 = vmul.f32 %v310_v61, %v166_v58  ;;  %vm188_vm8 = vweird.f32 %v310_v61  ;;  %v312_v13 = vpop.eup %311  ;;  %v175_v17 = vsel %vm174_vm15, %v308_v59, %v171_v11 }
  0xb5   :  { %vm189_vm12 = vmor %vm187_vm9, %vm188_vm8  ;;  %v180_v18 = vsel %vm177_vm0, %v179_v16, %v175_v17  ;;  %v314_v19 = vpop.eup %313 }
  0xb6   :  { %v184_v1 = vsub.f32 1.0, %v183_v62  ;;  %v199_v20 = vsel %vm158_vm14, %v180_v18, %v314_v19 }
  0xb8   :  { %v185_v3 = vmul.f32 %v310_v61, %v184_v1 }
  0xba   :  { %v186_v7 = vadd.f32 %v310_v61, %v185_v3 }
  0xbc   :  { %v190_v10 = vsel %vm189_vm12, %v310_v61, %v186_v7 }
  0xbd   :  { %v195_v14 = vsel %vm192_vm13, %v194_v8, %v190_v10 }
  0xbe   :  { %v200_v15 = vsel %vm158_vm14, %v195_v14, %v312_v13 }
  0xbf   :  { %203 = vrot.lane.b32.xlu0 %v200_v15, %s401_s2 }
  0xc7   :  { %201 = vrot.lane.b32.xlu0 %v199_v20, %s401_s2 }
 0x131   :  { %v204_v21 = vpop.permute.xlu0 %203 }
 0x132   :  { %v206_v22 = vmul.f32 %v204_v21, %v200_v15 }
 0x134   :  { %315 = vtanh.f32 %v206_v22 }
 0x139   :  { %v202_v23 = vpop.permute.xlu0 %201 }
 0x13a   :  { %v316_v24 = vpop.eup %315  ;;  %v205_v25 = vmul.f32 %v202_v23, %v199_v20 }
 0x13b   :  { %211 = vrot.lane.b32.xlu1 %v316_v24, %s402_s30 }
 0x13c   :  { %317 = vtanh.f32 %v205_v25 }
 0x142   :  { %v318_v26 = vpop.eup %317 }
 0x143   :  { %209 = vrot.lane.b32.xlu1 %v318_v26, %s402_s30 }
 0x1ad   :  { %v212_v31 = vpop.permute.xlu1 %211 }
 0x1ae   :  { %v214_v32 = vmul.f32 %v212_v31, %v200_v15 }
 0x1b0   :  { %227 = vrot.lane.b32.xlu2 %v214_v32, %s403_s14 }
 0x1b5   :  { %v210_v33 = vpop.permute.xlu1 %209 }
 0x1b6   :  { %v213_v34 = vmul.f32 %v210_v33, %v199_v20 }
 0x1b8   :  { %225 = vrot.lane.b32.xlu2 %v213_v34, %s403_s14 }
 0x20a   :  { %v228_v35 = vpop.permute.xlu2 %227 }
 0x20b   :  { %284 = vmatmul.msk.f32.vlgmr.msra.gmra.mxu3 %vm128_vm7, %v228_v35 }
 0x212   :  { %v226_v36 = vpop.permute.xlu2 %225 }
 0x213   :  { %283 = vmatmul.msk.f32.vlgmr.msra.gmra.mxu1 %vm128_vm7, %v226_v36 }
 0x28e   :  { %v253_v38 = vpop.f32.mrf.mxu3 }
 0x28f   :  { %v254_v39 = vadd.f32 %v302_v37, %v253_v38 }
 0x290   :  { %v250_v40 = vpop.f32.mrf.mxu1 }
 0x291   :  { %258 = vst.msk [vmem:[#allocation7 + $0x8] sm:$0xff] %vm256_vm1, %v254_v39  ;;  %v251_v41 = vadd.f32 %v302_v37, %v250_v40 }
 0x293   :  { %257 = vst.msk [vmem:[#allocation7] sm:$0xff] %vm256_vm1, %v251_v41 }
 0x294   :  { %271 = dma.vmem_to_hbm [thread:$0]  %s264_s17, 256, %s266_s20, [#allocation4], %s398_s26, %s398_s26, %s399_s27  }
 0x295   :  { %395 = dma.done.wait [#allocation4], 256  }
 0x296   :  { %396 = vsyncadd [#allocation4], 4294967040 }
 0x297   :  { %276 = vsyncpa [#allocation3], 1 }
 0x298   :  { %277 = vsyncpa [#allocation6], 1 }
 0x299   :  { %278 = vsyncpa [#allocation4], 1 }

</bundles_post_ra>
